<compile_context>
chip_gen: v5e
topology: v5e:2x2
jax: 0.10.0
libtpu: 0.0.40
codegen_flags: <defaults>
</compile_context>

<pallas_src>
import jax
import jax.numpy as jnp
from jax.experimental import pallas as pl
from jax.experimental.pallas import tpu as pltpu


def _round_up(x, m):
    return (x + m - 1) // m * m


def mlp_kernel(x_ref, w1_ref, b1_ref, w2_ref, b2_ref, w3_ref, b3_ref, o_ref):
    # Cast the activation tile to the weight dtype (bf16) in-kernel.
    x = x_ref[...].astype(w1_ref.dtype)
    # fc1: bf16 MXU matmul, f32 accumulation; bias + ReLU in f32 (VPU).
    h1 = jnp.dot(x, w1_ref[...], preferred_element_type=jnp.float32)
    h1 = jnp.maximum(h1 + b1_ref[...], 0.0)
    # dropout2(p=0.5): identity in eval/inference mode.
    # TODO(synk): training-mode dropout (pltpu.prng_random_bits mask) not implemented.
    # fc2
    h2 = jnp.dot(h1.astype(w2_ref.dtype), w2_ref[...],
                 preferred_element_type=jnp.float32)
    h2 = jnp.maximum(h2 + b2_ref[...], 0.0)
    # fc3 (logits, no activation); cast to output dtype only at the final store.
    out = jnp.dot(h2.astype(w3_ref.dtype), w3_ref[...],
                  preferred_element_type=jnp.float32) + b3_ref[...]
    o_ref[...] = out.astype(o_ref.dtype)


def neural_net_forward(x, w1, b1, w2, b2, w3, b3, *, tb=1024,
                       compute_dtype=jnp.bfloat16, training=False):
    """x: [B, D]; w_i: [in, out] (transposed vs nn.Linear.weight); b_i: [1, out]."""
    if training:
        raise NotImplementedError(
            "dropout2 only implemented as identity (inference/eval mode)")

    B, D = x.shape
    H1 = w1.shape[1]
    H2 = w2.shape[1]
    C = w3.shape[1]
    out_dtype = x.dtype

    # Batch tile: multiple of 16 (bf16 packs two rows per sublane), large enough
    # to amortize the ~0.35 us per-grid-step overhead, never larger than the
    # (padded) batch.  For large B the grid naturally has >=2 "parallel" steps,
    # so both TensorCores on v7x get work.
    tb_eff = min(_round_up(tb, 16), _round_up(B, 16))
    Bp = _round_up(B, tb_eff)

    # Only the batch dim is (possibly) padded; feature dims stay unpadded
    # (block dims equal to the full array dims are legal on TPU).
    xp = x if Bp == B else jnp.pad(x, ((0, Bp - B), (0, 0)))

    # One-time weight casts (bf16 MXU operands); biases stay f32 (post-accum add).
    w1c = w1.astype(compute_dtype)
    w2c = w2.astype(compute_dtype)
    w3c = w3.astype(compute_dtype)
    b1c = b1.astype(jnp.float32)
    b2c = b2.astype(jnp.float32)
    b3c = b3.astype(jnp.float32)

    grid = (Bp // tb_eff,)

    # Honest (unpadded) cost estimate for the XLA scheduler.
    flops = 2 * B * (D * H1 + H1 * H2 + H2 * C)
    bytes_accessed = (
        x.size * x.dtype.itemsize
        + (w1c.size + w2c.size + w3c.size) * jnp.dtype(compute_dtype).itemsize
        + (b1c.size + b2c.size + b3c.size) * 4
        + B * C * jnp.dtype(out_dtype).itemsize
    )

    out_padded = pl.pallas_call(
        mlp_kernel,
        out_shape=jax.ShapeDtypeStruct((Bp, C), out_dtype),
        grid_spec=pltpu.PrefetchScalarGridSpec(
            num_scalar_prefetch=0,
            grid=grid,
            in_specs=[
                pl.BlockSpec((tb_eff, D), lambda i: (i, 0)),   # x tile (batch-tiled)
                pl.BlockSpec((D, H1), lambda i: (0, 0)),       # W1 (resident)
                pl.BlockSpec((1, H1), lambda i: (0, 0)),       # b1
                pl.BlockSpec((H1, H2), lambda i: (0, 0)),      # W2
                pl.BlockSpec((1, H2), lambda i: (0, 0)),       # b2
                pl.BlockSpec((H2, C), lambda i: (0, 0)),       # W3
                pl.BlockSpec((1, C), lambda i: (0, 0)),        # b3
            ],
            out_specs=pl.BlockSpec((tb_eff, C), lambda i: (i, 0)),
        ),
        compiler_params=pltpu.CompilerParams(
            dimension_semantics=("parallel",),
        ),
        cost_estimate=pl.CostEstimate(
            flops=flops, transcendentals=0, bytes_accessed=bytes_accessed),
    )(xp, w1c, b1c, w2c, b2c, w3c, b3c)

    return out_padded if Bp == B else out_padded[:B]


def reference_forward(x, w1, b1, w2, b2, w3, b3, compute_dtype=jnp.bfloat16):
    # Same dtype recipe as the kernel (bf16 matmul inputs, f32 accumulation).
    xc = x.astype(compute_dtype)
    h1 = jnp.maximum(
        jnp.dot(xc, w1.astype(compute_dtype),
                preferred_element_type=jnp.float32) + b1, 0.0)
    h2 = jnp.maximum(
        jnp.dot(h1.astype(compute_dtype), w2.astype(compute_dtype),
                preferred_element_type=jnp.float32) + b2, 0.0)
    out = jnp.dot(h2.astype(compute_dtype), w3.astype(compute_dtype),
                  preferred_element_type=jnp.float32) + b3
    return out.astype(x.dtype)


if __name__ == "__main__":
    # Small shapes consistent with NeuralNet(input_size, [h1, h2], num_classes)
    input_size = 32
    hidden_size_list = [64, 32]
    num_classes = 8

    key = jax.random.PRNGKey(0)
    kx, k1, k2, k3, kb1, kb2, kb3 = jax.random.split(key, 7)

    # Deterministic param init (uniform, roughly matching nn.Linear's scale).
    def init_linear(kw, kb, fan_in, fan_out):
        bound = 1.0 / (fan_in ** 0.5)
        w = jax.random.uniform(kw, (fan_in, fan_out), jnp.float32, -bound, bound)
        b = jax.random.uniform(kb, (1, fan_out), jnp.float32, -bound, bound)
        return w, b

    w1, b1 = init_linear(k1, kb1, input_size, hidden_size_list[0])
    w2, b2 = init_linear(k2, kb2, hidden_size_list[0], hidden_size_list[1])
    w3, b3 = init_linear(k3, kb3, input_size if False else hidden_size_list[1],
                         num_classes)

    fwd = jax.jit(neural_net_forward, static_argnames=("tb",))

    # Case 1: tiny batch (single tile, batch padded 8 -> 16).
    B = 8
    x = jax.random.normal(kx, (B, input_size), dtype=jnp.float32)
    out = jax.block_until_ready(fwd(x, w1, b1, w2, b2, w3, b3))
    assert out.shape == (B, num_classes)
    assert out.dtype == x.dtype

    ref = reference_forward(x, w1, b1, w2, b2, w3, b3)
    assert jnp.allclose(out, ref, atol=1e-3, rtol=1e-3)

    ref32 = jnp.maximum(x @ w1 + b1, 0.0)
    ref32 = jnp.maximum(ref32 @ w2 + b2, 0.0)
    ref32 = ref32 @ w3 + b3
    assert jnp.allclose(out, ref32, atol=1e-1, rtol=1e-1)

    # Case 2: multi-tile grid with batch padding (B=300, tb=128 -> grid of 3).
    B2 = 300
    x2 = jax.random.normal(kx, (B2, input_size), dtype=jnp.float32)
    out2 = jax.block_until_ready(fwd(x2, w1, b1, w2, b2, w3, b3, tb=128))
    assert out2.shape == (B2, num_classes)
    ref2 = reference_forward(x2, w1, b1, w2, b2, w3, b3)
    assert jnp.allclose(out2, ref2, atol=1e-3, rtol=1e-3)

    print("KERNEL_OK")
</pallas_src>

<mosaic_0001>
module attributes {stable_mosaic.version = 11 : i64} {
  func.func @mlp_kernel(%arg0: i32, %arg1: memref<16x32xf32, #tpu.memory_space<vmem>>, %arg2: memref<32x64xbf16, #tpu.memory_space<vmem>>, %arg3: memref<1x64xf32, #tpu.memory_space<vmem>>, %arg4: memref<64x32xbf16, #tpu.memory_space<vmem>>, %arg5: memref<1x32xf32, #tpu.memory_space<vmem>>, %arg6: memref<32x8xbf16, #tpu.memory_space<vmem>>, %arg7: memref<1x8xf32, #tpu.memory_space<vmem>>, %arg8: memref<16x8xf32, #tpu.memory_space<vmem>>) attributes {dimension_semantics = [#tpu.dimension_semantics<parallel>], iteration_bounds = array<i64: 1>, scalar_prefetch = 0 : i64, scratch_operands = 0 : i64, tpu.core_type = #tpu.core_type<tc>, window_params = [{transform_indices = @transform_0, window_bounds = array<i64: 16, 32>}, {pipeline_mode = #tpu.pipeline_mode<synchronous>, transform_indices = @transform_1, window_bounds = array<i64: 32, 64>}, {pipeline_mode = #tpu.pipeline_mode<synchronous>, transform_indices = @transform_2, window_bounds = array<i64: 1, 64>}, {pipeline_mode = #tpu.pipeline_mode<synchronous>, transform_indices = @transform_3, window_bounds = array<i64: 64, 32>}, {pipeline_mode = #tpu.pipeline_mode<synchronous>, transform_indices = @transform_4, window_bounds = array<i64: 1, 32>}, {pipeline_mode = #tpu.pipeline_mode<synchronous>, transform_indices = @transform_5, window_bounds = array<i64: 32, 8>}, {pipeline_mode = #tpu.pipeline_mode<synchronous>, transform_indices = @transform_6, window_bounds = array<i64: 1, 8>}, {transform_indices = @transform_7, window_bounds = array<i64: 16, 8>}]} {
    %c0 = arith.constant 0 : index
    %c0_0 = arith.constant 0 : index
    %0 = vector.load %arg1[%c0, %c0_0] : memref<16x32xf32, #tpu.memory_space<vmem>>, vector<16x32xf32>
    %1 = arith.truncf %0 : vector<16x32xf32> to vector<16x32xbf16>
    %c0_1 = arith.constant 0 : index
    %c0_2 = arith.constant 0 : index
    %2 = vector.load %arg2[%c0_1, %c0_2] : memref<32x64xbf16, #tpu.memory_space<vmem>>, vector<32x64xbf16>
    %cst = arith.constant dense<0.000000e+00> : vector<16x64xf32>
    %3 = tpu.matmul %1, %2, %cst {dimension_numbers = #tpu.dot_dimension_numbers<[1], [0], [0], [1], [0, 0, 1, 1], [], []>} : vector<16x32xbf16>, vector<32x64xbf16>, vector<16x64xf32> -> vector<16x64xf32>
    %c0_3 = arith.constant 0 : index
    %c0_4 = arith.constant 0 : index
    %4 = vector.load %arg3[%c0_3, %c0_4] : memref<1x64xf32, #tpu.memory_space<vmem>>, vector<1x64xf32>
    %5 = vector.broadcast %4 : vector<1x64xf32> to vector<16x64xf32>
    %6 = arith.addf %3, %5 : vector<16x64xf32>
    %cst_5 = arith.constant 0.000000e+00 : f32
    %7 = vector.broadcast %cst_5 : f32 to vector<16x64xf32>
    %8 = arith.maximumf %6, %7 : vector<16x64xf32>
    %9 = arith.truncf %8 : vector<16x64xf32> to vector<16x64xbf16>
    %c0_6 = arith.constant 0 : index
    %c0_7 = arith.constant 0 : index
    %10 = vector.load %arg4[%c0_6, %c0_7] : memref<64x32xbf16, #tpu.memory_space<vmem>>, vector<64x32xbf16>
    %cst_8 = arith.constant dense<0.000000e+00> : vector<16x32xf32>
    %11 = tpu.matmul %9, %10, %cst_8 {dimension_numbers = #tpu.dot_dimension_numbers<[1], [0], [0], [1], [0, 0, 1, 1], [], []>} : vector<16x64xbf16>, vector<64x32xbf16>, vector<16x32xf32> -> vector<16x32xf32>
    %c0_9 = arith.constant 0 : index
    %c0_10 = arith.constant 0 : index
    %12 = vector.load %arg5[%c0_9, %c0_10] : memref<1x32xf32, #tpu.memory_space<vmem>>, vector<1x32xf32>
    %13 = vector.broadcast %12 : vector<1x32xf32> to vector<16x32xf32>
    %14 = arith.addf %11, %13 : vector<16x32xf32>
    %cst_11 = arith.constant 0.000000e+00 : f32
    %15 = vector.broadcast %cst_11 : f32 to vector<16x32xf32>
    %16 = arith.maximumf %14, %15 : vector<16x32xf32>
    %17 = arith.truncf %16 : vector<16x32xf32> to vector<16x32xbf16>
    %c0_12 = arith.constant 0 : index
    %c0_13 = arith.constant 0 : index
    %18 = vector.load %arg6[%c0_12, %c0_13] : memref<32x8xbf16, #tpu.memory_space<vmem>>, vector<32x8xbf16>
    %cst_14 = arith.constant dense<0.000000e+00> : vector<16x8xf32>
    %19 = tpu.matmul %17, %18, %cst_14 {dimension_numbers = #tpu.dot_dimension_numbers<[1], [0], [0], [1], [0, 0, 1, 1], [], []>} : vector<16x32xbf16>, vector<32x8xbf16>, vector<16x8xf32> -> vector<16x8xf32>
    %c0_15 = arith.constant 0 : index
    %c0_16 = arith.constant 0 : index
    %20 = vector.load %arg7[%c0_15, %c0_16] : memref<1x8xf32, #tpu.memory_space<vmem>>, vector<1x8xf32>
    %21 = vector.broadcast %20 : vector<1x8xf32> to vector<16x8xf32>
    %22 = arith.addf %19, %21 : vector<16x8xf32>
    %c0_17 = arith.constant 0 : index
    %c0_18 = arith.constant 0 : index
    %23 = vector.load %arg8[%c0_17, %c0_18] : memref<16x8xf32, #tpu.memory_space<vmem>>, vector<16x8xf32>
    tpu.vector_store %arg8[%c0_17, %c0_18], %22 {strides = array<i32>} : memref<16x8xf32, #tpu.memory_space<vmem>>, vector<16x8xf32>,
    return
  }
  func.func @transform_0(%arg0: i32) -> (i32, i32) {
    %c0_i32 = arith.constant 0 : i32
    %c0_i32_0 = arith.constant 0 : i32
    return %arg0, %c0_i32 : i32, i32
  }
  func.func @transform_1(%arg0: i32) -> (i32, i32) {
    %c0_i32 = arith.constant 0 : i32
    %c0_i32_0 = arith.constant 0 : i32
    %c0_i32_1 = arith.constant 0 : i32
    return %c0_i32, %c0_i32_0 : i32, i32
  }
  func.func @transform_2(%arg0: i32) -> (i32, i32) {
    %c0_i32 = arith.constant 0 : i32
    %c0_i32_0 = arith.constant 0 : i32
    %c0_i32_1 = arith.constant 0 : i32
    return %c0_i32, %c0_i32_0 : i32, i32
  }
  func.func @transform_3(%arg0: i32) -> (i32, i32) {
    %c0_i32 = arith.constant 0 : i32
    %c0_i32_0 = arith.constant 0 : i32
    %c0_i32_1 = arith.constant 0 : i32
    return %c0_i32, %c0_i32_0 : i32, i32
  }
  func.func @transform_4(%arg0: i32) -> (i32, i32) {
    %c0_i32 = arith.constant 0 : i32
    %c0_i32_0 = arith.constant 0 : i32
    %c0_i32_1 = arith.constant 0 : i32
    return %c0_i32, %c0_i32_0 : i32, i32
  }
  func.func @transform_5(%arg0: i32) -> (i32, i32) {
    %c0_i32 = arith.constant 0 : i32
    %c0_i32_0 = arith.constant 0 : i32
    %c0_i32_1 = arith.constant 0 : i32
    return %c0_i32, %c0_i32_0 : i32, i32
  }
  func.func @transform_6(%arg0: i32) -> (i32, i32) {
    %c0_i32 = arith.constant 0 : i32
    %c0_i32_0 = arith.constant 0 : i32
    %c0_i32_1 = arith.constant 0 : i32
    return %c0_i32, %c0_i32_0 : i32, i32
  }
  func.func @transform_7(%arg0: i32) -> (i32, i32) {
    %c0_i32 = arith.constant 0 : i32
    %c0_i32_0 = arith.constant 0 : i32
    return %arg0, %c0_i32 : i32, i32
  }
}

</mosaic_0001>

<bundles_post_ra>
// kernel: neural_net_forward.1
= control target key start
LH: loop header
LB: loop body
LE: loop exit
PB: predicated region body
PF: predicated region fallthrough
CT: control target
= control target key end

     0   :  { %vm50_vm0 = vcmask 261120   ;;  %vm107_vm1 = vcmask 523264   ;;  %vm165_vm2 = vcmask 64512   ;;  %s305_s1 = inlined_call_operand.vmem [shape: bf16[32,64], index: 1, kind: input, shape index: {}]   ;;  %s306_s0 = inlined_call_operand.vmem [shape: f32[16,32], index: 0, kind: input, shape index: {}]   ;;  %s307_s2 = inlined_call_operand.vmem [shape: f32[1,64], index: 2, kind: input, shape index: {}]   ;;  %s308_s4 = inlined_call_operand.vmem [shape: f32[1,32], index: 4, kind: input, shape index: {}]   ;;  %s309_s3 = inlined_call_operand.vmem [shape: bf16[64,32], index: 3, kind: input, shape index: {}]   ;;  %s310_s6 = inlined_call_operand.vmem [shape: f32[1,8], index: 6, kind: input, shape index: {}]   ;;  %s311_s5 = inlined_call_operand.vmem [shape: bf16[32,8], index: 5, kind: input, shape index: {}]   ;;  %s312_s7 = inlined_call_operand.vmem [shape: f32[16,8], index: 7, kind: output, shape index: {}]  }
   0x1   :  { %v208_v0 = vld [vmem:[%s305_s1 + $0x8] sm:$0xff]  ;;  %v207_v1 = vld [vmem:[%s305_s1] sm:$0xff]  ;;  %v212_v5 = vld [vmem:[%s309_s3 + $0x18] sm:$0xff] }
   0x2   :  { %60 = vmatpush.bf16.msra.mxu0 %v208_v0  ;;  %v27_v2 = vld [vmem:[%s306_s0] sm:$0xff]  ;;  %v28_v3 = vld [vmem:[%s306_s0 + $0x8] sm:$0xff]  ;;  %115 = vmatpush.bf16.msra.mxu1 %v212_v5  ;;  %v211_v6 = vld [vmem:[%s309_s3 + $0x10] sm:$0xff] }
   0x3   :  { %v29_v4 = vpack.c.bf16 %v28_v3, %v27_v2  ;;  %v210_v7 = vld [vmem:[%s309_s3 + $0x8] sm:$0xff]  ;;  %v209_v8 = vld [vmem:[%s309_s3] sm:$0xff] }
   0x4   :  { %v215_v10 = vld [vmem:[%s307_s2] ss:$0 sm:$0xff]  ;;  %v214_v17 = vld [vmem:[%s311_s5 + $0x8] sm:$0xff] }
   0x5   :  { %157 = vmatpush.bf16.msra.mxu2 %v214_v17  ;;  %v213_v18 = vld [vmem:[%s311_s5] sm:$0xff] }
   0x6   :  { %61 = vmatpush.bf16.msra.mxu0 %v207_v1  ;;  %116 = vmatpush.bf16.msra.mxu1 %v211_v6  ;;  %v216_v20 = vld [vmem:[%s308_s4] ss:$0 sm:$0xff] }
   0x7   :  { %v217_v27 = vld [vmem:[%s310_s6] ss:$0 sm:$0xff] }
   0x9   :  { %180 = vmatmul.msk.bf16.vlgmr.msra.gmra.mxu0 %vm50_vm0, %v29_v4  ;;  %158 = vmatpush.bf16.msra.mxu2 %v213_v18 }
   0xa   :  { %117 = vmatpush.bf16.msra.mxu1 %v210_v7 }
   0xe   :  { %118 = vmatpush.bf16.msra.mxu1 %v209_v8 }
  0x86   :  { %v63_v9 = vpop.f32.mrf.mxu0 }
  0x87   :  { %v64_v11 = vadd.f32 %v215_v10, %v63_v9 }
  0x89   :  { %v68_v14 = vmax.f32 %v64_v11, 0.0 }
  0x8e   :  { %v65_v12 = vpop.f32.mrf.mxu0 }
  0x8f   :  { %v66_v13 = vadd.f32 %v215_v10, %v65_v12 }
  0x91   :  { %v69_v15 = vmax.f32 %v66_v13, 0.0 }
  0x93   :  { %v70_v16 = vpack.c.bf16 %v69_v15, %v68_v14 }
  0x95   :  { %197 = vmatmul.msk.bf16.vlgmr.msra.gmra.mxu1 %vm107_vm1, %v70_v16 }
 0x112   :  { %v120_v19 = vpop.f32.mrf.mxu1 }
 0x113   :  { %v121_v21 = vadd.f32 %v216_v20, %v120_v19 }
 0x115   :  { %v125_v24 = vmax.f32 %v121_v21, 0.0 }
 0x11a   :  { %v122_v22 = vpop.f32.mrf.mxu1 }
 0x11b   :  { %v123_v23 = vadd.f32 %v216_v20, %v122_v22 }
 0x11d   :  { %v126_v25 = vmax.f32 %v123_v23, 0.0 }
 0x11f   :  { %v127_v26 = vpack.c.bf16 %v126_v25, %v125_v24 }
 0x121   :  { %206 = vmatmul.msk.bf16.vlgmr.msra.gmra.mxu2 %vm50_vm0, %v127_v26 }
 0x1a4   :  { %v160_v28 = vpop.f32.mrf.mxu2 }
 0x1a5   :  { %v161_v29 = vadd.f32 %v217_v27, %v160_v28 }
 0x1a7   :  { %166 = vst.msk [vmem:[%s312_s7] sm:$0xff] %vm165_vm2, %v161_v29 }
 0x1ac   :  { %v162_v30 = vpop.f32.mrf.mxu2 }
 0x1ad   :  { %v163_v31 = vadd.f32 %v217_v27, %v162_v30 }
 0x1af   :  { %167 = vst.msk [vmem:[%s312_s7 + $0x8] sm:$0xff] %vm165_vm2, %v163_v31 }

</bundles_post_ra>
